<compile_context>
chip_gen: v7x
topology: tpu7x:2x2x1
jax: 0.10.0
libtpu: 0.0.40
codegen_flags: <defaults>
</compile_context>

<pallas_src>
import functools

import numpy as np
import jax
import jax.numpy as jnp
from jax import lax
from jax.experimental import pallas as pl
from jax.experimental.pallas import tpu as pltpu


def _injector_kernel(fis_ref, pes_ref, fi_ref,
                     wq_ref, bq_ref, wkv_ref, bkv_ref,
                     uh_ref, uw_ref, gamma_ref, o_ref, *, mm_dtype):
    gb, n, c = fis_ref.shape          # batch-group, sampled positions, channels
    H, h = uh_ref.shape               # full / sampled height
    W, w = uw_ref.shape               # full / sampled width
    d = wq_ref.shape[1]               # hidden dim (== c for the residual add)

    fis = fis_ref[...]                                    # (gb, n, c)
    fact = fis * pes_ref[...]                             # (gb, n, c)  F_act_i

    # 1x1 stride-s convs == per-position linear layers on the sampled grid.
    # Batch group folded into the M dimension; K and V fused into one matmul.
    fis2 = fis.reshape(gb * n, c).astype(mm_dtype)
    fact2 = fact.reshape(gb * n, c).astype(mm_dtype)
    q = (jnp.dot(fis2, wq_ref[...].astype(mm_dtype),
                 preferred_element_type=jnp.float32) + bq_ref[...])
    kv = (jnp.dot(fact2, wkv_ref[...].astype(mm_dtype),
                  preferred_element_type=jnp.float32) + bkv_ref[...])
    q = (q * (1.0 / float(d) ** 0.5)).reshape(gb, n, d)   # fold 1/sqrt(d) into Q
    kv = kv.reshape(gb, n, 2 * d)
    k = kv[:, :, :d]
    v = kv[:, :, d:]

    # attention = softmax(Q K^T / sqrt(d)); the contraction is taken directly
    # by dot_general (no explicit transpose relayout), batched over gb.
    logits = lax.dot_general(q.astype(mm_dtype), k.astype(mm_dtype),
                             dimension_numbers=(((2,), (2,)), ((0,), (0,))),
                             preferred_element_type=jnp.float32)      # (gb, n, n)
    mx = jnp.max(logits, axis=-1, keepdims=True)
    e = jnp.exp(logits - mx)
    # softmax denom via the (otherwise idle) EUP approximate reciprocal.
    attn = e * pl.reciprocal(jnp.sum(e, axis=-1, keepdims=True), approx=True)

    fp = lax.dot_general(attn.astype(mm_dtype), v.astype(mm_dtype),
                         dimension_numbers=(((2,), (1,)), ((0,), (0,))),
                         preferred_element_type=jnp.float32)          # (gb, n, d)

    # Separable bilinear upsample (align_corners=False) — two small matmuls
    # instead of a dense (HW x N) kron(Uh, Uw) matrix:
    #   (1) W axis first, batched over the gb*h sampled rows,
    #   (2) H axis, batched over gb, landing directly in the lane-dense
    #       (gb, H, W*d) layout used for the residual / output store.
    fp_rows = fp.reshape(gb * h, w, d).astype(mm_dtype)               # (gb*h, w, d)
    uw_b = jnp.broadcast_to(uw_ref[...].astype(mm_dtype)[None], (gb * h, W, w))
    t = lax.dot_general(uw_b, fp_rows,
                        dimension_numbers=(((2,), (1,)), ((0,), (0,))),
                        preferred_element_type=jnp.float32)           # (gb*h, W, d)
    t = t.reshape(gb, h, W * d).astype(mm_dtype)
    uh_b = jnp.broadcast_to(uh_ref[...].astype(mm_dtype)[None], (gb, H, h))
    fup = lax.dot_general(uh_b, t,
                          dimension_numbers=(((2,), (1,)), ((0,), (0,))),
                          preferred_element_type=jnp.float32)         # (gb, H, W*d)

    # gamma * F'_i + Fi   (residual; full-lane-width store)
    gamma = gamma_ref[0]
    o_ref[...] = (gamma * fup + fi_ref[...].astype(jnp.float32)).astype(o_ref.dtype)


@functools.lru_cache(maxsize=None)
def _bilinear_matrix_np(out_size: int, in_size: int):
    """Row-stochastic (out,in) matrix == torch bilinear, align_corners=False.

    Built host-side with numpy (cached) so no scatter-add XLA ops are traced.
    """
    scale = in_size / out_size
    dst = np.arange(out_size, dtype=np.float64)
    src = np.maximum((dst + 0.5) * scale - 0.5, 0.0)
    i0 = np.clip(np.floor(src).astype(np.int64), 0, in_size - 1)
    i1 = np.minimum(i0 + 1, in_size - 1)
    lam = (src - i0).astype(np.float32)
    m = np.zeros((out_size, in_size), np.float32)
    rows = np.arange(out_size)
    np.add.at(m, (rows, i0), 1.0 - lam)
    np.add.at(m, (rows, i1), lam)
    return m


def prior_aligned_injector(fi_nhwc, pe, params, *, stride=4, batch_block=None,
                           matmul_dtype=jnp.float32):
    # matmul_dtype=jnp.bfloat16 is the v6e/v7x option (f32 accumulation kept);
    # default stays f32 so the tight correctness check below holds.
    wq, bq = params["wq"], params["bq"]
    wk, bk = params["wk"], params["bk"]
    wv, bv = params["wv"], params["bv"]
    gamma = params["gamma"]

    B, H, W, C = fi_nhwc.shape
    D = wq.shape[1]
    assert D == C, "gamma*F'_i + Fi residual requires hidden_dim == in_channels"

    # Conv2d(kernel=1, stride=s, no padding) samples pixels 0, s, 2s, ...
    fis = fi_nhwc[:, ::stride, ::stride, :]               # (B, h, w, C)
    pes = pe[:, 0, ::stride, ::stride]                    # (B, h, w)
    h, w = fis.shape[1], fis.shape[2]
    N = h * w

    fis = fis.reshape(B, N, C)
    pes = pes.reshape(B, N, 1)
    fi_flat = fi_nhwc.reshape(B, H, W * C)                # lane-dense residual/output

    # Fold several batch elements per grid step (amortize per-step overhead,
    # raise the MXU M dim) while keeping >=2 grid steps for megacore.
    if batch_block is None:
        batch_block = max(1, B // 2)
    assert B % batch_block == 0, "B must be divisible by batch_block"
    G = B // batch_block
    gb = batch_block

    # Fused K/V projection; interpolation matrices are host-side constants.
    wkv = jnp.concatenate([wk, wv], axis=1)               # (C, 2D)
    bkv = jnp.concatenate([bk, bv], axis=0).reshape(1, 2 * D)
    bq2 = bq.reshape(1, D)
    gamma1 = gamma.reshape(1).astype(jnp.float32)         # scalar -> SMEM
    uh = jnp.asarray(_bilinear_matrix_np(H, h))           # (H, h)
    uw = jnp.asarray(_bilinear_matrix_np(W, w))           # (W, w)

    def per_batch(shape):
        return pl.BlockSpec((gb,) + shape, lambda g: (g, 0, 0))

    def shared(shape):
        return pl.BlockSpec(shape, lambda g: (0, 0))

    out = pl.pallas_call(
        functools.partial(_injector_kernel, mm_dtype=matmul_dtype),
        out_shape=jax.ShapeDtypeStruct((B, H, W * C), fi_nhwc.dtype),
        grid=(G,),
        in_specs=[
            per_batch((N, C)),                       # Fi on the sampled grid
            per_batch((N, 1)),                       # Pe on the sampled grid
            per_batch((H, W * C)),                   # Fi residual (lane-dense)
            shared((C, D)), shared((1, D)),          # W_q, b_q
            shared((C, 2 * D)), shared((1, 2 * D)),  # [W_k | W_v], [b_k | b_v]
            shared((H, h)), shared((W, w)),          # Uh, Uw (separable bilinear)
            pl.BlockSpec(memory_space=pltpu.MemorySpace.SMEM),   # gamma scalar
        ],
        out_specs=per_batch((H, W * C)),
        compiler_params=pltpu.CompilerParams(
            dimension_semantics=("parallel",)),
    )(fis, pes, fi_flat, wq, bq2, wkv, bkv, uh, uw, gamma1)

    return out.reshape(B, H, W, C)


# ----------------------------------------------------------------------------
# Pure-JAX reference (dense kron form) with identical semantics, for validation.
# ----------------------------------------------------------------------------
def _bilinear_matrix_ref(out_size, in_size, dtype=jnp.float32):
    scale = in_size / out_size
    dst = jnp.arange(out_size, dtype=jnp.float32)
    src = jnp.maximum((dst + 0.5) * scale - 0.5, 0.0)
    i0 = jnp.clip(jnp.floor(src).astype(jnp.int32), 0, in_size - 1)
    i1 = jnp.minimum(i0 + 1, in_size - 1)
    lam = src - i0.astype(jnp.float32)
    rows = jnp.arange(out_size)
    m = jnp.zeros((out_size, in_size), dtype)
    m = m.at[rows, i0].add((1.0 - lam).astype(dtype))
    m = m.at[rows, i1].add(lam.astype(dtype))
    return m


def reference(fi_nhwc, pe, params, *, stride=4):
    wq, bq, wk, bk, wv, bv, gamma = (params[k] for k in
                                     ("wq", "bq", "wk", "bk", "wv", "bv", "gamma"))
    B, H, W, C = fi_nhwc.shape
    fis = fi_nhwc[:, ::stride, ::stride, :]
    pes = pe[:, 0, ::stride, ::stride][..., None]
    h, w = fis.shape[1], fis.shape[2]
    N = h * w
    fact = (fis * pes).reshape(B, N, C)
    fis = fis.reshape(B, N, C)
    q = fis @ wq + bq
    k = fact @ wk + bk
    v = fact @ wv + bv
    attn = jax.nn.softmax((q @ jnp.swapaxes(k, 1, 2)) / wq.shape[1] ** 0.5, axis=-1)
    fp = attn @ v
    u = jnp.kron(_bilinear_matrix_ref(H, h), _bilinear_matrix_ref(W, w))
    fup = jnp.einsum("pn,bnd->bpd", u, fp)
    out = gamma.reshape(1, 1, 1) * fup + fi_nhwc.reshape(B, H * W, C)
    return out.reshape(B, H, W, C)


if __name__ == "__main__":
    B, H, W = 4, 16, 16
    C = 8            # in_channels
    D = C            # hidden_dim (must equal in_channels for the residual add)
    stride = 4

    key = jax.random.PRNGKey(0)
    ks = jax.random.split(key, 8)
    fi = jax.random.normal(ks[0], (B, H, W, C), jnp.float32)        # NHWC input
    pe = jax.random.uniform(ks[1], (B, 1, H, W), jnp.float32)       # prior map

    params = dict(
        wq=0.1 * jax.random.normal(ks[2], (C, D), jnp.float32),
        bq=0.1 * jax.random.normal(ks[3], (D,), jnp.float32),
        wk=0.1 * jax.random.normal(ks[4], (C, D), jnp.float32),
        bk=0.1 * jax.random.normal(ks[5], (D,), jnp.float32),
        wv=0.1 * jax.random.normal(ks[6], (C, D), jnp.float32),
        bv=0.1 * jax.random.normal(ks[7], (D,), jnp.float32),
        # torch init is gamma = 0 (output == Fi); use a nonzero deterministic
        # value so the attention / upsample path is actually exercised.
        gamma=jnp.array([0.5], jnp.float32),
    )

    fwd = jax.jit(functools.partial(prior_aligned_injector, stride=stride))
    out = jax.block_until_ready(fwd(fi, pe, params))

    ref = reference(fi, pe, params, stride=stride)
    assert out.shape == (B, H, W, C)
    # tolerance covers the approximate (EUP) reciprocal in the softmax denom
    assert jnp.allclose(out, ref, atol=2e-3, rtol=2e-3), "kernel mismatch vs reference"

    print("KERNEL_OK")
</pallas_src>

<mosaic_0001>
module attributes {stable_mosaic.version = 11 : i64} {
  func.func @_injector_kernel(%arg0: i32, %arg1: memref<2x16x8xf32, #tpu.memory_space<vmem>>, %arg2: memref<2x16x1xf32, #tpu.memory_space<vmem>>, %arg3: memref<2x16x128xf32, #tpu.memory_space<vmem>>, %arg4: memref<8x8xf32, #tpu.memory_space<vmem>>, %arg5: memref<1x8xf32, #tpu.memory_space<vmem>>, %arg6: memref<8x16xf32, #tpu.memory_space<vmem>>, %arg7: memref<1x16xf32, #tpu.memory_space<vmem>>, %arg8: memref<16x4xf32, #tpu.memory_space<vmem>>, %arg9: memref<16x4xf32, #tpu.memory_space<vmem>>, %arg10: memref<1xf32, #tpu.memory_space<smem>>, %arg11: memref<2x16x128xf32, #tpu.memory_space<vmem>>) attributes {dimension_semantics = [#tpu.dimension_semantics<parallel>], iteration_bounds = array<i64: 2>, scalar_prefetch = 0 : i64, scratch_operands = 0 : i64, tpu.core_type = #tpu.core_type<tc>, window_params = [{transform_indices = @transform_0, window_bounds = array<i64: 2, 16, 8>}, {transform_indices = @transform_1, window_bounds = array<i64: 2, 16, 1>}, {transform_indices = @transform_2, window_bounds = array<i64: 2, 16, 128>}, {pipeline_mode = #tpu.pipeline_mode<synchronous>, transform_indices = @transform_3, window_bounds = array<i64: 8, 8>}, {pipeline_mode = #tpu.pipeline_mode<synchronous>, transform_indices = @transform_4, window_bounds = array<i64: 1, 8>}, {pipeline_mode = #tpu.pipeline_mode<synchronous>, transform_indices = @transform_5, window_bounds = array<i64: 8, 16>}, {pipeline_mode = #tpu.pipeline_mode<synchronous>, transform_indices = @transform_6, window_bounds = array<i64: 1, 16>}, {pipeline_mode = #tpu.pipeline_mode<synchronous>, transform_indices = @transform_7, window_bounds = array<i64: 16, 4>}, {pipeline_mode = #tpu.pipeline_mode<synchronous>, transform_indices = @transform_8, window_bounds = array<i64: 16, 4>}, {transform_indices = @transform_9, window_bounds = array<i64: 1>}, {transform_indices = @transform_10, window_bounds = array<i64: 2, 16, 128>}]} {
    %c0 = arith.constant 0 : index
    %c0_0 = arith.constant 0 : index
    %c0_1 = arith.constant 0 : index
    %0 = vector.load %arg1[%c0, %c0_0, %c0_1] : memref<2x16x8xf32, #tpu.memory_space<vmem>>, vector<2x16x8xf32>
    %c0_2 = arith.constant 0 : index
    %c0_3 = arith.constant 0 : index
    %c0_4 = arith.constant 0 : index
    %1 = vector.load %arg2[%c0_2, %c0_3, %c0_4] : memref<2x16x1xf32, #tpu.memory_space<vmem>>, vector<2x16x1xf32>
    %2 = vector.broadcast %1 : vector<2x16x1xf32> to vector<2x16x8xf32>
    %3 = arith.mulf %0, %2 : vector<2x16x8xf32>
    %4 = vector.shape_cast %0 : vector<2x16x8xf32> to vector<32x8xf32>
    %5 = vector.shape_cast %3 : vector<2x16x8xf32> to vector<32x8xf32>
    %c0_5 = arith.constant 0 : index
    %c0_6 = arith.constant 0 : index
    %6 = vector.load %arg4[%c0_5, %c0_6] : memref<8x8xf32, #tpu.memory_space<vmem>>, vector<8x8xf32>
    %cst = arith.constant dense<0.000000e+00> : vector<32x8xf32>
    %7 = tpu.matmul %4, %6, %cst {dimension_numbers = #tpu.dot_dimension_numbers<[1], [0], [0], [1], [0, 0, 1, 1], [], []>} : vector<32x8xf32>, vector<8x8xf32>, vector<32x8xf32> -> vector<32x8xf32>
    %c0_7 = arith.constant 0 : index
    %c0_8 = arith.constant 0 : index
    %8 = vector.load %arg5[%c0_7, %c0_8] : memref<1x8xf32, #tpu.memory_space<vmem>>, vector<1x8xf32>
    %9 = vector.broadcast %8 : vector<1x8xf32> to vector<32x8xf32>
    %10 = arith.addf %7, %9 : vector<32x8xf32>
    %c0_9 = arith.constant 0 : index
    %c0_10 = arith.constant 0 : index
    %11 = vector.load %arg6[%c0_9, %c0_10] : memref<8x16xf32, #tpu.memory_space<vmem>>, vector<8x16xf32>
    %cst_11 = arith.constant dense<0.000000e+00> : vector<32x16xf32>
    %12 = tpu.matmul %5, %11, %cst_11 {dimension_numbers = #tpu.dot_dimension_numbers<[1], [0], [0], [1], [0, 0, 1, 1], [], []>} : vector<32x8xf32>, vector<8x16xf32>, vector<32x16xf32> -> vector<32x16xf32>
    %c0_12 = arith.constant 0 : index
    %c0_13 = arith.constant 0 : index
    %13 = vector.load %arg7[%c0_12, %c0_13] : memref<1x16xf32, #tpu.memory_space<vmem>>, vector<1x16xf32>
    %14 = vector.broadcast %13 : vector<1x16xf32> to vector<32x16xf32>
    %15 = arith.addf %12, %14 : vector<32x16xf32>
    %cst_14 = arith.constant 0.353553385 : f32
    %16 = vector.broadcast %cst_14 : f32 to vector<32x8xf32>
    %17 = arith.mulf %10, %16 : vector<32x8xf32>
    %18 = vector.shape_cast %17 : vector<32x8xf32> to vector<2x16x8xf32>
    %19 = vector.shape_cast %15 : vector<32x16xf32> to vector<2x16x16xf32>
    %20 = vector.extract_strided_slice %19 {offsets = [0, 0, 0], sizes = [2, 16, 8], strides = [1, 1, 1]} : vector<2x16x16xf32> to vector<2x16x8xf32>
    %21 = vector.extract_strided_slice %19 {offsets = [0, 0, 8], sizes = [2, 16, 8], strides = [1, 1, 1]} : vector<2x16x16xf32> to vector<2x16x8xf32>
    %cst_15 = arith.constant dense<0.000000e+00> : vector<2x16x16xf32>
    %22 = tpu.matmul %18, %20, %cst_15 {dimension_numbers = #tpu.dot_dimension_numbers<[2], [2], [1], [1], [0, 0, 0, 1, 1, 1], [0], [0]>} : vector<2x16x8xf32>, vector<2x16x8xf32>, vector<2x16x16xf32> -> vector<2x16x16xf32>
    %cst_16 = arith.constant dense<0xFF800000> : vector<2x16xf32>
    %23 = vector.multi_reduction <maximumf>, %22, %cst_16 [2] : vector<2x16x16xf32> to vector<2x16xf32>
    %24 = vector.shape_cast %23 : vector<2x16xf32> to vector<2x16x1xf32>
    %25 = vector.broadcast %24 : vector<2x16x1xf32> to vector<2x16x16xf32>
    %26 = arith.subf %22, %25 : vector<2x16x16xf32>
    %27 = math.exp %26 : vector<2x16x16xf32>
    %cst_17 = arith.constant dense<0.000000e+00> : vector<2x16xf32>
    %28 = vector.multi_reduction <add>, %27, %cst_17 [2] : vector<2x16x16xf32> to vector<2x16xf32>
    %29 = vector.shape_cast %28 : vector<2x16xf32> to vector<2x16x1xf32>
    %30 = tpu.reciprocal %29 {approx = true} : vector<2x16x1xf32> -> vector<2x16x1xf32>
    %31 = vector.broadcast %30 : vector<2x16x1xf32> to vector<2x16x16xf32>
    %32 = arith.mulf %27, %31 : vector<2x16x16xf32>
    %cst_18 = arith.constant dense<0.000000e+00> : vector<2x16x8xf32>
    %33 = tpu.matmul %32, %21, %cst_18 {dimension_numbers = #tpu.dot_dimension_numbers<[2], [1], [1], [2], [0, 0, 0, 1, 1, 2], [0], [0]>} : vector<2x16x16xf32>, vector<2x16x8xf32>, vector<2x16x8xf32> -> vector<2x16x8xf32>
    %34 = vector.shape_cast %33 : vector<2x16x8xf32> to vector<8x4x8xf32>
    %c0_19 = arith.constant 0 : index
    %c0_20 = arith.constant 0 : index
    %35 = vector.load %arg9[%c0_19, %c0_20] : memref<16x4xf32, #tpu.memory_space<vmem>>, vector<16x4xf32>
    %36 = vector.shape_cast %35 : vector<16x4xf32> to vector<1x16x4xf32>
    %37 = vector.shape_cast %36 : vector<1x16x4xf32> to vector<1x16x4xf32>
    %38 = vector.broadcast %37 : vector<1x16x4xf32> to vector<8x16x4xf32>
    %cst_21 = arith.constant dense<0.000000e+00> : vector<8x16x8xf32>
    %39 = tpu.matmul %38, %34, %cst_21 {dimension_numbers = #tpu.dot_dimension_numbers<[2], [1], [1], [2], [0, 0, 0, 1, 1, 2], [0], [0]>} : vector<8x16x4xf32>, vector<8x4x8xf32>, vector<8x16x8xf32> -> vector<8x16x8xf32>
    %40 = vector.shape_cast %39 : vector<8x16x8xf32> to vector<2x4x128xf32>
    %c0_22 = arith.constant 0 : index
    %c0_23 = arith.constant 0 : index
    %41 = vector.load %arg8[%c0_22, %c0_23] : memref<16x4xf32, #tpu.memory_space<vmem>>, vector<16x4xf32>
    %42 = vector.shape_cast %41 : vector<16x4xf32> to vector<1x16x4xf32>
    %43 = vector.shape_cast %42 : vector<1x16x4xf32> to vector<1x16x4xf32>
    %44 = vector.broadcast %43 : vector<1x16x4xf32> to vector<2x16x4xf32>
    %cst_24 = arith.constant dense<0.000000e+00> : vector<2x16x128xf32>
    %45 = tpu.matmul %44, %40, %cst_24 {dimension_numbers = #tpu.dot_dimension_numbers<[2], [1], [1], [2], [0, 0, 0, 1, 1, 2], [0], [0]>} : vector<2x16x4xf32>, vector<2x4x128xf32>, vector<2x16x128xf32> -> vector<2x16x128xf32>
    %c0_25 = arith.constant 0 : index
    %46 = memref.load %arg10[%c0_25] : memref<1xf32, #tpu.memory_space<smem>>
    %47 = vector.broadcast %46 : f32 to vector<2x16x128xf32>
    %48 = arith.mulf %47, %45 : vector<2x16x128xf32>
    %c0_26 = arith.constant 0 : index
    %c0_27 = arith.constant 0 : index
    %c0_28 = arith.constant 0 : index
    %49 = vector.load %arg3[%c0_26, %c0_27, %c0_28] : memref<2x16x128xf32, #tpu.memory_space<vmem>>, vector<2x16x128xf32>
    %50 = arith.addf %48, %49 : vector<2x16x128xf32>
    %c0_29 = arith.constant 0 : index
    %c0_30 = arith.constant 0 : index
    %c0_31 = arith.constant 0 : index
    %51 = vector.load %arg11[%c0_29, %c0_30, %c0_31] : memref<2x16x128xf32, #tpu.memory_space<vmem>>, vector<2x16x128xf32>
    tpu.vector_store %arg11[%c0_29, %c0_30, %c0_31], %50 {strides = array<i32>} : memref<2x16x128xf32, #tpu.memory_space<vmem>>, vector<2x16x128xf32>,
    return
  }
  func.func @transform_0(%arg0: i32) -> (i32, i32, i32) {
    %c0_i32 = arith.constant 0 : i32
    %c0_i32_0 = arith.constant 0 : i32
    %c0_i32_1 = arith.constant 0 : i32
    return %arg0, %c0_i32, %c0_i32_0 : i32, i32, i32
  }
  func.func @transform_1(%arg0: i32) -> (i32, i32, i32) {
    %c0_i32 = arith.constant 0 : i32
    %c0_i32_0 = arith.constant 0 : i32
    %c0_i32_1 = arith.constant 0 : i32
    return %arg0, %c0_i32, %c0_i32_0 : i32, i32, i32
  }
  func.func @transform_2(%arg0: i32) -> (i32, i32, i32) {
    %c0_i32 = arith.constant 0 : i32
    %c0_i32_0 = arith.constant 0 : i32
    %c0_i32_1 = arith.constant 0 : i32
    return %arg0, %c0_i32, %c0_i32_0 : i32, i32, i32
  }
  func.func @transform_3(%arg0: i32) -> (i32, i32) {
    %c0_i32 = arith.constant 0 : i32
    %c0_i32_0 = arith.constant 0 : i32
    %c0_i32_1 = arith.constant 0 : i32
    return %c0_i32, %c0_i32_0 : i32, i32
  }
  func.func @transform_4(%arg0: i32) -> (i32, i32) {
    %c0_i32 = arith.constant 0 : i32
    %c0_i32_0 = arith.constant 0 : i32
    %c0_i32_1 = arith.constant 0 : i32
    return %c0_i32, %c0_i32_0 : i32, i32
  }
  func.func @transform_5(%arg0: i32) -> (i32, i32) {
    %c0_i32 = arith.constant 0 : i32
    %c0_i32_0 = arith.constant 0 : i32
    %c0_i32_1 = arith.constant 0 : i32
    return %c0_i32, %c0_i32_0 : i32, i32
  }
  func.func @transform_6(%arg0: i32) -> (i32, i32) {
    %c0_i32 = arith.constant 0 : i32
    %c0_i32_0 = arith.constant 0 : i32
    %c0_i32_1 = arith.constant 0 : i32
    return %c0_i32, %c0_i32_0 : i32, i32
  }
  func.func @transform_7(%arg0: i32) -> (i32, i32) {
    %c0_i32 = arith.constant 0 : i32
    %c0_i32_0 = arith.constant 0 : i32
    %c0_i32_1 = arith.constant 0 : i32
    return %c0_i32, %c0_i32_0 : i32, i32
  }
  func.func @transform_8(%arg0: i32) -> (i32, i32) {
    %c0_i32 = arith.constant 0 : i32
    %c0_i32_0 = arith.constant 0 : i32
    %c0_i32_1 = arith.constant 0 : i32
    return %c0_i32, %c0_i32_0 : i32, i32
  }
  func.func @transform_9(%arg0: i32) -> i32 {
    %c0_i32 = arith.constant 0 : i32
    %c0_i32_0 = arith.constant 0 : i32
    return %c0_i32 : i32
  }
  func.func @transform_10(%arg0: i32) -> (i32, i32, i32) {
    %c0_i32 = arith.constant 0 : i32
    %c0_i32_0 = arith.constant 0 : i32
    %c0_i32_1 = arith.constant 0 : i32
    return %arg0, %c0_i32, %c0_i32_0 : i32, i32, i32
  }
}

</mosaic_0001>

<bundles_post_ra>
// kernel: squeeze.0
= control target key start
LH: loop header
LB: loop body
LE: loop exit
PB: predicated region body
PF: predicated region fallthrough
CT: control target
= control target key end

     0   :  { %vm21_vm0 = vcmask 7168   ;;  %s95_s16 = smov 127   ;;  %s96_s23 = smov 125   ;;  %s159_s0 = inlined_call_operand.vmem [shape: f32[4,1,4,4], index: 0, kind: input, shape index: {}]   ;;  %s160_s1 = inlined_call_operand.vmem [shape: f32[4,16,1], index: 1, kind: output, shape index: {}]  }
   0x1   :  { %v81_v0 = vld [vmem:[%s159_s0 + $0x4] sm:$0xf]  ;;  %v18_v1 = vld [vmem:[%s159_s0] sm:$0xf]  ;;  %v79_v2 = vld [vmem:[%s159_s0 + $0xc] sm:$0xf] }
   0x2   :  { %17 = vst [vmem:[#allocation0 + $0x8] sm:$0xf] %v81_v0  ;;  %19 = vst [vmem:[#allocation0] sm:$0xf] %v18_v1  ;;  %v80_v3 = vld [vmem:[%s159_s0 + $0x8] sm:$0xf] }
   0x3   :  { %8 = vst [vmem:[#allocation0 + $0x18] sm:$0xf] %v79_v2  ;;  %13 = vst [vmem:[#allocation0 + $0x10] sm:$0xf] %v80_v3  ;;  %s94_s0 = smov 126  }
   0x9   :  { %v51_v4 = vld.sshfl [vmem:[#allocation0] sm:$0xff pattern:$0xba983210]  }
   0xa   :  { %v20_v5 = vld [vmem:[#allocation0] sm:$0xf]   ;;  %52 = vrot.lane.b32.xlu1 %v51_v4, %s94_s0  ;;  %39 = vrot.lane.b32.xlu0 %v51_v4, %s95_s16  ;;  %v24_v6 = vld [vmem:[#allocation0 + $0x8] sm:$0xf]   ;;  %v29_v8 = vld [vmem:[#allocation0 + $0x10] sm:$0xf]  }
   0xb   :  { %22 = vst.msk [vmem:[%s160_s1] ss:$4 sm:$0xf] %vm21_vm0, %v20_v5   ;;  %v58_v7 = vld.sshfl [vmem:[#allocation0 + $0x10] sm:$0xff pattern:$0xba983210]  }
   0xc   :  { %82 = vst.msk [vmem:[%s160_s1 + $0x10] ss:$4 sm:$0xf] %vm21_vm0, %v24_v6   ;;  %v34_v9 = vld [vmem:[#allocation0 + $0x18] sm:$0xf]  }
   0xd   :  { %83 = vst.msk [vmem:[%s160_s1 + $0x20] ss:$4 sm:$0xf] %vm21_vm0, %v29_v8   ;;  %84 = vst.msk [vmem:[%s160_s1 + $0x30] ss:$4 sm:$0xf] %vm21_vm0, %v34_v9  }
   0xe   :  { %59 = vrot.lane.b32.xlu1 %v58_v7, %s94_s0  ;;  %46 = vrot.lane.b32.xlu0 %v58_v7, %s95_s16 }
  0x12   :  { %72 = vrot.lane.b32.xlu1 %v58_v7, %s96_s23  ;;  %65 = vrot.lane.b32.xlu0 %v51_v4, %s96_s23 }
  0x7c   :  { %v53_v10 = vpop.permute.xlu1 %52   ;;  %v40_v11 = vpop.permute.xlu0 %39  }
  0x7d   :  { %87 = vst.msk [vmem:[%s160_s1 + $0x2] ss:$4 sm:$0xff] %vm21_vm0, %v53_v10   ;;  %85 = vst.msk [vmem:[%s160_s1 + $0x1] ss:$4 sm:$0xff] %vm21_vm0, %v40_v11  }
  0x80   :  { %v60_v12 = vpop.permute.xlu1 %59   ;;  %v47_v13 = vpop.permute.xlu0 %46  }
  0x81   :  { %88 = vst.msk [vmem:[%s160_s1 + $0x22] ss:$4 sm:$0xff] %vm21_vm0, %v60_v12   ;;  %86 = vst.msk [vmem:[%s160_s1 + $0x21] ss:$4 sm:$0xff] %vm21_vm0, %v47_v13  }
  0x84   :  { %v73_v14 = vpop.permute.xlu1 %72   ;;  %v66_v15 = vpop.permute.xlu0 %65  }
  0x85   :  { %90 = vst.msk [vmem:[%s160_s1 + $0x23] ss:$4 sm:$0xff] %vm21_vm0, %v73_v14   ;;  %89 = vst.msk [vmem:[%s160_s1 + $0x3] ss:$4 sm:$0xff] %vm21_vm0, %v66_v15  }

// kernel: prior_aligned_injector.1
= control target key start
LH: loop header
LB: loop body
LE: loop exit
PB: predicated region body
PF: predicated region fallthrough
CT: control target
= control target key end

     0   :  { %s2777_s15 = smov 0   ;;  %s3013_s0 = inlined_call_operand.vmem [shape: f32[4,16,8], index: 0, kind: input, shape index: {}]   ;;  %s3014_s1 = inlined_call_operand.vmem [shape: f32[4,16,1], index: 1, kind: input, shape index: {}]   ;;  %s3015_s2 = inlined_call_operand.vmem [shape: f32[4,16,128], index: 2, kind: input, shape index: {}]   ;;  %s3016_s3 = inlined_call_operand.vmem [shape: f32[8,8], index: 3, kind: input, shape index: {}]   ;;  %s3017_s4 = inlined_call_operand.vmem [shape: f32[1,8], index: 4, kind: input, shape index: {}]   ;;  %s3018_s5 = inlined_call_operand.vmem [shape: f32[8,16], index: 5, kind: input, shape index: {}]   ;;  %s3019_s6 = inlined_call_operand.vmem [shape: f32[1,16], index: 6, kind: input, shape index: {}]   ;;  %s3020_s7 = inlined_call_operand.vmem [shape: f32[16,4], index: 7, kind: input, shape index: {}, may-alias: {7,8}]   ;;  %s3021_s8 = inlined_call_operand.vmem [shape: f32[16,4], index: 8, kind: input, shape index: {}, may-alias: {7,8}]   ;;  %s3022_s9 = inlined_call_operand.<no memory space> [shape: f32[1], index: 9, kind: input, shape index: {}]   ;;  %s3023_s10 = inlined_call_operand.vmem [shape: f32[4,16,128], index: 10, kind: output, shape index: {}]  }
   0x1   :  { %15 = sst [smem:[#allocation2]] %s3022_s9 }
   0x2 LB: > { %s2392_s16 = sadd.s32 4294967295, %s2698_s15   ;;  %p2396_p0 = scmp.ge.s32.totalorder %s2698_s15, 1  ;;  %s2698_s15 = sphi %s2777_s15, %s21_s15  }
   0x3   : > { %p339_p1 = scmp.lt.s32.totalorder %s2698_s15, 3 }
   0x5   : > { %p340_p2 = pnand %p2396_p0, %p339_p1 }
   0x6   : > { %s2397_s17 = sshll.u32 (!%p340_p2), %s2392_s16, 1  ;;  %v2700_v0 = vmov (!%p340_p2), 0   ;;  %vm459_vm0 = vcmask (!%p340_p2), 64512   ;;  %v557_v6 = vld [vmem:[%s3018_s5] sm:$0xff] (!%p340_p2)  ;;  %vm840_vm2 = vcmask (!%p340_p2), 130048   ;;  %s2701_s12 = smov (!%p340_p2), 120  }
   0x7   : > { %343 = sbr.rel (%p340_p2) target bundleno = 1749 (0x6d5), region = 60  ;;  %2665 = vset.pattern.permute.xlu1 (!%p340_p2), %v2700_v0  ;;  %2664 = vset.pattern.permute.xlu0 (!%p340_p2), %v2700_v0  ;;  %p392_p3 = scmp.lt.s32.totalorder (!%p340_p2), %s2397_s17, 3  ;;  %v451_v7 = vld [vmem:[%s3016_s3] sm:$0xff] (!%p340_p2)  ;;  %vm2618_vm1 = vmpackc.low (!%p340_p2), %vm459_vm0, %vm459_vm0  ;;  %vm1069_vm3 = vcmask (!%p340_p2), 31744   ;;  %vm1076_vm4 = vcmask (!%p340_p2), 1043456   ;;  %vm2089_vm5 = vcmask (!%p340_p2), 195584  }
   0x8   : > { %2531 = vmatprep.subr.mxu1 (!%p340_p2), %v557_v6  ;;  %2523 = vmatprep.subr.mxu0 (!%p340_p2), %v451_v7  ;;  %v2409_v20 = vld [vmem:[%s3017_s4] ss:$0 sm:$0xff] (!%p340_p2)  ;;  %s2704_s18 = smov (!%p340_p2), 64   ;;  %s2706_s19 = smov (!%p340_p2), 8   ;;  %vm2092_vm6 = vcmask (!%p340_p2), 261120   ;;  %vm2095_vm7 = vcmask (!%p340_p2), 326656  }
   0x9   : > { %2532 = vmatpush3.msra.mxu1 (!%p340_p2), %v557_v6  ;;  %2524 = vmatpush3.msra.mxu0 (!%p340_p2), %v451_v7  ;;  %v2414_v30 = vld [vmem:[%s3019_s6] ss:$0 sm:$0xff] (!%p340_p2)  ;;  %s2708_s21 = smov (!%p340_p2), 96   ;;  %s2709_s22 = smov (!%p340_p2), 16   ;;  %vm2098_vm8 = vcmask (!%p340_p2), 392192   ;;  %vm2101_vm9 = vcmask (!%p340_p2), 457728  }
   0xa   : > { %s2711_s24 = smov (!%p340_p2), 48   ;;  %s2712_s25 = smov (!%p340_p2), 72   ;;  %vm2104_vm10 = vcmask (!%p340_p2), 523264   ;;  %vm2107_vm11 = vcmask (!%p340_p2), 588800   ;;  %vm2110_vm12 = vcmask (!%p340_p2), 654336   ;;  %vm2113_vm13 = vcmask (!%p340_p2), 719872  }
   0xb   : > { %s2713_s26 = smov (!%p340_p2), 88   ;;  %s2714_s27 = smov (!%p340_p2), 104   ;;  %vm2116_vm14 = vcmask (!%p340_p2), 785408   ;;  %vm2119_vm15 = vcmask (!%p340_p2), 850944  }
   0xc   : > { %s2715_s28 = smov (!%p340_p2), 24   ;;  %s2716_s29 = smov (!%p340_p2), 40  }
   0xd   : > { %s2717_s30 = smov (!%p340_p2), 56   ;;  %s2718_s11 = smov (!%p340_p2), 112  }
   0xe   : > { %s3025_s17 = smov (!%p392_p3, %s2397_s17), 3 }
   0xf   : > { %s2785_s9 = sshll.u32 %s3025_s17, 4  ;;  %s2292_s17 = sld [smem:[#allocation2]] }
  0x10   : > { %s403_s20 = scalar_lea.vmem %s3014_s1, %s2785_s9  ;;  %s396_s23 = scalar_lea.vmem %s3013_s0, %s2785_s9 }
  0x11   : > { %v425_v1 = vld [vmem:[%s403_s20 + $0x10] sm:$0xff]  ;;  %v423_v2 = vld [vmem:[%s403_s20] sm:$0xff]  ;;  %v426_v4 = vld [vmem:[%s403_s20 + $0x18] sm:$0xff] }
  0x12   : > { %439 = vperm.xlu1 %2665, %v425_v1   ;;  %429 = vperm.xlu0 %2664, %v423_v2   ;;  %v419_v3 = vld [vmem:[%s396_s23] sm:$0xff]  ;;  %v424_v5 = vld [vmem:[%s403_s20 + $0x8] sm:$0xff]  ;;  %v421_v9 = vld [vmem:[%s396_s23 + $0x10] sm:$0xff]  ;;  %s2707_s20 = smov 80  }
  0x13   : > { %2525 = vmatprep.mubr.msk.f32.mxu0 %vm459_vm0, %v419_v3  ;;  %v420_v8 = vld [vmem:[%s396_s23 + $0x8] sm:$0xff]  ;;  %v422_v10 = vld [vmem:[%s396_s23 + $0x18] sm:$0xff]  ;;  %s2710_s23 = smov 32  }
  0x14   : > { %2526 = vmatmul.mubr.msk.f32.vlgmr.msra.gmra.mrb[0].mxu0 %vm459_vm0, %v420_v8 }
  0x15   : > { %2528 = vmatprep.mubr.msk.f32.mxu0 %vm459_vm0, %v421_v9 }
  0x16   : > { %444 = vperm.xlu1 %2665, %v426_v4   ;;  %434 = vperm.xlu0 %2664, %v424_v5  }
  0x18   : > { %2529 = vmatmul.mubr.msk.f32.gmra.mrb[2].mxu0 %vm459_vm0, %v422_v10 }
  0x91   : > { %v440_v11 = vpop.permute.xlu1 %439  ;;  %v430_v12 = vpop.permute.xlu0 %429 }
  0x92   : > { %v447_v13 = vmul.f32 %v430_v12, %v419_v3  ;;  %v449_v14 = vmul.f32 %v440_v11, %v421_v9 }
  0x94   : > { %2533 = vmatprep.mubr.msk.f32.mxu1 %vm459_vm0, %v447_v13 }
  0x95   : > { %v435_v15 = vpop.permute.xlu0 %434  ;;  %v445_v17 = vpop.permute.xlu1 %444 }
  0x96   : > { %v448_v16 = vmul.f32 %v435_v15, %v420_v8  ;;  %v450_v18 = vmul.f32 %v445_v17, %v422_v10 }
  0x98   : > { %2534 = vmatmul.mubr.msk.f32.vlgmr.msra.gmra.mrb[0].mxu1 %vm459_vm0, %v448_v16 }
  0x99   : > { %2536 = vmatprep.mubr.msk.f32.mxu1 %vm459_vm0, %v449_v14 }
  0x9c   : > { %2537 = vmatmul.mubr.msk.f32.gmra.mrb[2].mxu1 %vm459_vm0, %v450_v18 }
  0xe7   : > { %v2527_v19 = vpop.f32.mrb[0].mxu0 }
  0xe8   : > { %v538_v21 = vpop.f32.mrb[1].mxu0  ;;  %v544_v22 = vadd.f32 %v2527_v19, %v2409_v20 }
  0xe9   : > { %v539_v23 = vadd.f32 %v2409_v20, %v538_v21 }
  0xea   : > { %v663_v43 = vmul.f32 0.35355338, %v544_v22 }
  0xeb   : > { %v2530_v24 = vpop.f32.mrb[2].mxu0  ;;  %v662_v26 = vmul.f32 0.35355338, %v539_v23 }
  0xec   : > { %v554_v25 = vadd.f32 %v2530_v24, %v2409_v20  ;;  %v548_v27 = vpop.f32.mrb[3].mxu0 }
  0xed   : > { %v549_v28 = vadd.f32 %v2409_v20, %v548_v27  ;;  %2543 = vmatprep.mubr.msk.f32.mxu0 %vm459_vm0, %v662_v26 }
  0xee   : > { %v665_v44 = vmul.f32 0.35355338, %v554_v25 }
  0xef   : > { %v664_v29 = vmul.f32 0.35355338, %v549_v28 }
  0xf1   : > { %2550 = vmatprep.mubr.msk.f32.mxu1 %vm459_vm0, %v664_v29  ;;  %v1067_v29 = vld [vmem:[%s3021_s8] sm:$0xff] }
 0x16b   : > { %v2535_v31 = vpop.f32.mrb[0].mxu1 }
 0x16c   : > { %v649_v32 = vadd.f32 %v2535_v31, %v2414_v30  ;;  %v643_v33 = vpop.f32.mrb[1].mxu1 }
 0x16d   : > { %v644_v34 = vadd.f32 %v2414_v30, %v643_v33 }
 0x16f   : > { %v2666_v35 = vpack.i.bf16 %v649_v32, %v644_v34  ;;  %v2617_v36 = vpack.c.bf16 %v649_v32, %v644_v34  ;;  %v2538_v37 = vpop.f32.mrb[2].mxu1  ;;  %v1068_v32 = vld [vmem:[%s3021_s8 + $0x8] sm:$0xff] }
 0x170   : > { %v659_v38 = vadd.f32 %v2538_v37, %v2414_v30  ;;  %v653_v39 = vpop.f32.mrb[3].mxu1 }
 0x171   : > { %v654_v40 = vadd.f32 %v2414_v30, %v653_v39  ;;  %2619 = vmatprep.subr.msk.bf16.mxu0 %vm2618_vm1, %v2617_v36  ;;  %v2702_v39 = vmov 1983009808  }
 0x172   : > { %2622 = vmatpush3.bf16.xpose.msk.msra.mxu0 %vm2618_vm1, %v2617_v36 }
 0x173   : > { %v2671_v41 = vpack.i.bf16 %v659_v38, %v654_v40  ;;  %v2623_v42 = vpack.c.bf16 %v659_v38, %v654_v40  ;;  %v1696_v40 = vunpack.c.l.s4 %v2702_v39 }
 0x175   : > { %2625 = vmatprep.subr.msk.bf16.mxu1 %vm2618_vm1, %v2623_v42 }
 0x176   : > { %2628 = vmatpush3.bf16.xpose.msk.msra.mxu1 %vm2618_vm1, %v2623_v42  ;;  %vm2122_vm1 = vcmask 916480  }
 0x179   : > { %2544 = vmatmul.mubr.msk.f32.vlgmr.msra.gmra.mrb[4].mxu0 %vm459_vm0, %v663_v43 }
 0x17d   : > { %2551 = vmatmul.mubr.msk.f32.vlgmr.msra.gmra.mrb[4].mxu1 %vm459_vm0, %v665_v44  ;;  %v2703_v44 = vmov 1934713408  }
 0x24c   : > { %v2545_v45 = vpop.f32.mrb[4].mxu0 }
 0x24d   : > { %v744_v46 = vpop.f32.mrb[5].mxu0  ;;  %v844_v47 = vsel %vm840_vm2, %v2545_v45, -inf }
 0x24e   : > { %845 = vmax.xlane.f32.xlu1 %v844_v47  ;;  %v841_v48 = vsel %vm840_vm2, %v744_v46, -inf  ;;  %v1697_v47 = vunpack.c.0.s8 %v1696_v40  ;;  %v2705_v40 = vmov 0.0  }
 0x24f   : > { %842 = vmax.xlane.f32.xlu0 %v841_v48 }
 0x250   : > { %v2552_v49 = vpop.f32.mrb[4].mxu1 }
 0x251   : > { %v831_v50 = vpop.f32.mrb[5].mxu1  ;;  %v850_v52 = vsel %vm840_vm2, %v2552_v49, -inf }
 0x252   : > { %v847_v51 = vsel %vm840_vm2, %v831_v50, -inf }
 0x253   : > { %848 = vmax.xlane.f32.xlu0 %v847_v51 }
 0x257   : > { %851 = vmax.xlane.f32.xlu0 %v850_v52 }
 0x2db   : > { %v846_v53 = vpop.xlane.xlu1 %845 }
 0x2dc   : > { %v854_v54 = vsub.f32 %v2545_v45, %v846_v53  ;;  %v843_v55 = vpop.xlane.xlu0 %842  ;;  %v1728_v45 = vunpack.c.l.s4 %v2703_v44 }
 0x2dd   : > { %v853_v56 = vsub.f32 %v744_v46, %v843_v55 }
 0x2de   : > { %v859_v57 = vmul.f32 1.442695, %v854_v54  ;;  %v1729_v51 = vunpack.c.0.s8 %v1728_v45 }
 0x2df   : > { %v857_v58 = vmul.f32 1.442695, %v853_v56 }
 0x2e0   : > { %2676 = vpow2.f32 %v859_v57  ;;  %v849_v59 = vpop.xlane.xlu0 %848 }
 0x2e1   : > { %2678 = vpow2.f32 %v857_v58  ;;  %v855_v60 = vsub.f32 %v831_v50, %v849_v59 }
 0x2e3   : > { %v861_v61 = vmul.f32 1.442695, %v855_v60 }
 0x2e4   : > { %v852_v62 = vpop.xlane.xlu0 %851 }
 0x2e5   : > { %2680 = vpow2.f32 %v861_v61  ;;  %v856_v63 = vsub.f32 %v2552_v49, %v852_v62 }
 0x2e7   : > { %v863_v0 = vmul.f32 1.442695, %v856_v63 }
 0x2e9   : > { %2682 = vpow2.f32 %v863_v0 }
 0x2ea   : > { %v2677_v1 = vpop.eup %2676 }
 0x2eb   : > { %v2679_v2 = vpop.eup %2678  ;;  %v868_v3 = vsel %vm840_vm2, %v2677_v1, 0.0 }
 0x2ec   : > { %869 = vadd.xlane.f32.xlu0 %v868_v3  ;;  %v865_v4 = vsel %vm840_vm2, %v2679_v2, 0.0 }
 0x2ed   : > { %866 = vadd.xlane.f32.xlu1 %v865_v4 }
 0x2ef   : > { %v2681_v5 = vpop.eup %2680 }
 0x2f0   : > { %v871_v6 = vsel %vm840_vm2, %v2681_v5, 0.0 }
 0x2f1   : > { %872 = vadd.xlane.f32.xlu1 %v871_v6 }
 0x2f3   : > { %v2683_v7 = vpop.eup %2682 }
 0x2f4   : > { %v874_v8 = vsel %vm840_vm2, %v2683_v7, 0.0 }
 0x2f5   : > { %875 = vadd.xlane.f32.xlu0 %v874_v8 }
 0x302   : > { %2667 = vrot.lane.b32.xlu1 %v2666_v35, %s2701_s12 }
 0x30b   : > { %2672 = vrot.lane.b32.xlu0 %v2671_v41, %s2701_s12  ;;  %v1698_v41 = vlaneseq }
 0x30d   : > { %v1699_v48 = vshrl.u32 %v1698_v41, 7 }
 0x30f   : > { %v1700_v52 = vsub.s32 %v1697_v47, %v1699_v48 }
 0x379   : > { %v870_v9 = vpop.xlane.xlu0 %869 }
 0x37a   : > { %v867_v10 = vpop.xlane.xlu1 %866 }
 0x37b   : > { %2684 = vrcp.f32 %v867_v10 }
 0x37c   : > { %2686 = vrcp.f32 %v870_v9 }
 0x37e   : > { %v873_v11 = vpop.xlane.xlu1 %872 }
 0x37f   : > { %2688 = vrcp.f32 %v873_v11 }
 0x382   : > { %v2668_v12 = vpop.permute.xlu1 %2667  ;;  %v876_v13 = vpop.xlane.xlu0 %875 }
 0x383   : > { %v2670_v14 = vunpack.i.h.bf16 %v2668_v12  ;;  %v2669_v15 = vunpack.i.l.bf16 %v2668_v12  ;;  %2690 = vrcp.f32 %v876_v13 }
 0x385   : > { %v2685_v16 = vpop.eup %2684  ;;  %v2629_v17 = vpack.c.bf16 %v2670_v14, %v2669_v15 }
 0x386   : > { %v2687_v18 = vpop.eup %2686  ;;  %v2673_v19 = vpop.permute.xlu0 %2672  ;;  %v881_v20 = vmul.f32 %v2685_v16, %v2679_v2 }
 0x387   : > { %v2675_v21 = vunpack.i.h.bf16 %v2673_v19  ;;  %v2674_v22 = vunpack.i.l.bf16 %v2673_v19  ;;  %2630 = vmatprep.subr.bf16.mxu0 %v2629_v17  ;;  %v882_v24 = vmul.f32 %v2687_v18, %v2677_v1  ;;  %v2873_v1 = vsub.s32 %v1729_v51, %v1699_v48 }
 0x388   : > { %2632 = vmatpush3.bf16.msra.mxu0 %v2629_v17  ;;  %2557 = vmatprep.mubr.msk.f32.mxu0 %vm840_vm2, %v881_v20 }
 0x389   : > { %v2689_v23 = vpop.eup %2688  ;;  %v2633_v25 = vpack.c.bf16 %v2675_v21, %v2674_v22 }
 0x38a   : > { %v883_v26 = vmul.f32 %v2689_v23, %v2681_v5 }
 0x38b   : > { %2558 = vmatmul.mubr.msk.f32.vlgmr.msra.gmra.mrb[6].mxu0 %vm840_vm2, %v882_v24  ;;  %2634 = vmatprep.subr.bf16.mxu1 %v2633_v25 }
 0x38c   : > { %2636 = vmatpush3.bf16.msra.mxu1 %v2633_v25  ;;  %2564 = vmatprep.mubr.msk.f32.mxu1 %vm840_vm2, %v883_v26 }
 0x38d   : > { %v2691_v27 = vpop.eup %2690  ;;  %2569 = vmatprep.mubr.msk.f32.mxu0 %vm1069_vm3, %v1067_v29 }
 0x38e   : > { %v884_v28 = vmul.f32 %v2691_v27, %v2683_v7 }
 0x390   : > { %2565 = vmatmul.mubr.msk.f32.vlgmr.msra.gmra.mrb[6].mxu1 %vm840_vm2, %v884_v28 }
 0x391   : > { %2574 = vmatprep.mubr.msk.f32.mxu1 %vm1069_vm3, %v1067_v29 }
 0x45e   : > { %v2559_v30 = vpop.f32.mrb[6].mxu0 }
 0x45f   : > { %v963_v31 = vpop.f32.mrb[7].mxu0  ;;  %v1064_v34 = vcombine.high %v2559_v30, %v2559_v30 }
 0x460   : > { %v1063_v33 = vcombine.high %v963_v31, %v963_v31  ;;  %2567 = vmatprep.subr.msk.mxu0 %vm1076_vm4, %v963_v31 }
 0x461   : > { %2568 = vmatpush3.msk.msra.mxu0 %vm1076_vm4, %v963_v31 }
 0x462   : > { %2570 = vmatmul.mubr.msk.f32.vlgmr.msra.gmra.mrb[8].mxu0 %vm1069_vm3, %v1068_v32  ;;  %2572 = vmatprep.subr.msk.mxu1 %vm1076_vm4, %v1063_v33 }
 0x463   : > { %2577 = vmatprep.subr.msk.mxu0 %vm1076_vm4, %v2559_v30  ;;  %v2566_v35 = vpop.f32.mrb[6].mxu1  ;;  %2573 = vmatpush3.msk.msra.mxu1 %vm1076_vm4, %v1063_v33 }
 0x464   : > { %2578 = vmatpush3.msk.msra.mxu0 %vm1076_vm4, %v2559_v30  ;;  %v1050_v36 = vpop.f32.mrb[7].mxu1  ;;  %2575 = vmatmul.mubr.msk.f32.vlgmr.msra.gmra.mrb[8].mxu1 %vm1069_vm3, %v1068_v32  ;;  %v1066_v38 = vcombine.high %v2566_v35, %v2566_v35 }
 0x465   : > { %v1065_v37 = vcombine.high %v1050_v36, %v1050_v36  ;;  %2582 = vmatprep.subr.msk.mxu1 %vm1076_vm4, %v1064_v34  ;;  %2579 = vmatprep.mubr.msk.f32.mxu0 %vm1069_vm3, %v1067_v29 }
 0x466   : > { %2583 = vmatpush3.msk.msra.mxu1 %vm1076_vm4, %v1064_v34  ;;  %2587 = vmatprep.subr.msk.mxu0 %vm1076_vm4, %v1050_v36 }
 0x467   : > { %2580 = vmatmul.mubr.msk.f32.vlgmr.msra.gmra.mrb[10].mxu0 %vm1069_vm3, %v1068_v32  ;;  %2584 = vmatprep.mubr.msk.f32.mxu1 %vm1069_vm3, %v1067_v29 }
 0x468   : > { %2588 = vmatpush3.msk.msra.mxu0 %vm1076_vm4, %v1050_v36  ;;  %2592 = vmatprep.subr.msk.mxu1 %vm1076_vm4, %v1065_v37 }
 0x469   : > { %2597 = vmatprep.subr.msk.mxu0 %vm1076_vm4, %v2566_v35  ;;  %2585 = vmatmul.mubr.msk.f32.vlgmr.msra.gmra.mrb[10].mxu1 %vm1069_vm3, %v1068_v32 }
 0x46a   : > { %2593 = vmatpush3.msk.msra.mxu1 %vm1076_vm4, %v1065_v37  ;;  %2589 = vmatprep.mubr.msk.f32.mxu0 %vm1069_vm3, %v1067_v29 }
 0x46b   : > { %2602 = vmatprep.subr.msk.mxu1 %vm1076_vm4, %v1066_v38  ;;  %2590 = vmatmul.mubr.msk.f32.vlgmr.msra.gmra.mrb[12].mxu0 %vm1069_vm3, %v1068_v32 }
 0x46c   : > { %2598 = vmatpush3.msk.msra.mxu0 %vm1076_vm4, %v2566_v35  ;;  %2594 = vmatprep.mubr.msk.f32.mxu1 %vm1069_vm3, %v1067_v29 }
 0x46d   : > { %2595 = vmatmul.mubr.msk.f32.vlgmr.msra.gmra.mrb[12].mxu1 %vm1069_vm3, %v1068_v32  ;;  %2599 = vmatprep.mubr.msk.f32.mxu0 %vm1069_vm3, %v1067_v29 }
 0x46e   : > { %2603 = vmatpush3.msk.msra.mxu1 %vm1076_vm4, %v1066_v38  ;;  %2604 = vmatprep.mubr.msk.f32.mxu1 %vm1069_vm3, %v1067_v29 }
 0x46f   : > { %2600 = vmatmul.mubr.msk.f32.vlgmr.msra.gmra.mrb[14].mxu0 %vm1069_vm3, %v1068_v32 }
 0x471   : > { %2605 = vmatmul.mubr.msk.f32.vlgmr.msra.gmra.mrb[14].mxu1 %vm1069_vm3, %v1068_v32 }
 0x535   : > { %v2571_v42 = vpop.f32.mrb[8].mxu0 }
 0x536   : > { %v1145_v43 = vpop.f32.mrb[9].mxu0 }
 0x537   : > { %v2576_v46 = vpop.f32.mrb[8].mxu1 }
 0x538   : > { %v1222_v49 = vpop.f32.mrb[9].mxu1 }
 0x53a   : > { %v2581_v50 = vpop.f32.mrb[10].mxu0 }
 0x53b   : > { %v1761_v53 = vcombine.low %v2571_v42, %v2581_v50  ;;  %v1762_v54 = vcombine.high %v2571_v42, %v2581_v50  ;;  %v1299_v55 = vpop.f32.mrb[11].mxu0 }
 0x53c   : > { %v1693_v56 = vcombine.low %v1145_v43, %v1299_v55  ;;  %v1694_v57 = vcombine.high %v1145_v43, %v1299_v55  ;;  %v2586_v58 = vpop.f32.mrb[10].mxu1 }
 0x53d   : > { %v1777_v59 = vcombine.low %v2576_v46, %v2586_v58  ;;  %v1778_v60 = vcombine.high %v2576_v46, %v2586_v58  ;;  %v1376_v61 = vpop.f32.mrb[11].mxu1  ;;  %v1769_v2 = vrot.slane %v1761_v53, %v1700_v52  ;;  %v2875_v3 = vrot.slane %v1762_v54, %v1700_v52 }
 0x53e   : > { %v1709_v62 = vcombine.low %v1222_v49, %v1376_v61  ;;  %v1710_v63 = vcombine.high %v1222_v49, %v1376_v61  ;;  %v2591_v0 = vpop.f32.mrb[12].mxu0  ;;  %v1701_v7 = vrot.slane %v1693_v56, %v1700_v52  ;;  %v2879_v8 = vrot.slane %v1694_v57, %v1700_v52 }
 0x53f   : > { %v1785_v4 = vrot.slane %v1777_v59, %v1700_v52  ;;  %v2877_v5 = vrot.slane %v1778_v60, %v1700_v52  ;;  %v1453_v6 = vpop.f32.mrb[13].mxu0 }
 0x540   : > { %v1717_v9 = vrot.slane %v1709_v62, %v1700_v52  ;;  %v2881_v10 = vrot.slane %v1710_v63, %v1700_v52  ;;  %v2596_v11 = vpop.f32.mrb[12].mxu1 }
 0x541   : > { %v1793_v12 = vcombine.low %v1769_v2, %v1785_v4  ;;  %v1794_v13 = vcombine.high %v1769_v2, %v1785_v4  ;;  %v1809_v14 = vcombine.low %v2875_v3, %v2877_v5  ;;  %v1810_v15 = vcombine.high %v2875_v3, %v2877_v5  ;;  %v1530_v16 = vpop.f32.mrb[13].mxu1 }
 0x542   : > { %v1725_v17 = vcombine.low %v1701_v7, %v1717_v9  ;;  %v1726_v18 = vcombine.high %v1701_v7, %v1717_v9  ;;  %v1741_v19 = vcombine.low %v2879_v8, %v2881_v10  ;;  %v1742_v20 = vcombine.high %v2879_v8, %v2881_v10  ;;  %v2601_v21 = vpop.f32.mrb[14].mxu0 }
 0x543   : > { %v1897_v22 = vcombine.low %v2591_v0, %v2601_v21  ;;  %v1898_v23 = vcombine.high %v2591_v0, %v2601_v21  ;;  %v1607_v24 = vpop.f32.mrb[15].mxu0  ;;  %v1801_v25 = vrot.slane %v1793_v12, %v2873_v1  ;;  %v1808_v36 = vrot.slane %v1794_v13, %v2873_v1 }
 0x544   : > { %v1829_v26 = vcombine.low %v1453_v6, %v1607_v24  ;;  %v1830_v27 = vcombine.high %v1453_v6, %v1607_v24  ;;  %v2606_v28 = vpop.f32.mrb[14].mxu1  ;;  %v2893_v29 = vrot.slane %v1725_v17, %v2873_v1  ;;  %v1740_v57 = vrot.slane %v1726_v18, %v2873_v1 }
 0x545   : > { %v1913_v30 = vcombine.low %v2596_v11, %v2606_v28  ;;  %v1914_v31 = vcombine.high %v2596_v11, %v2606_v28  ;;  %2023 = vrot.lane.b32.xlu0 %v1801_v25, %s2704_s18  ;;  %v1684_v32 = vpop.f32.mrb[15].mxu1  ;;  %v1905_v33 = vrot.slane %v1897_v22, %v1700_v52  ;;  %v2896_v37 = vrot.slane %v1898_v23, %v1700_v52 }
 0x546   : > { %v1845_v34 = vcombine.low %v1530_v16, %v1684_v32  ;;  %v1846_v35 = vcombine.high %v1530_v16, %v1684_v32  ;;  %v1757_v41 = vcombine.high %v2893_v29, %v2705_v40  ;;  %v1837_v42 = vrot.slane %v1829_v26, %v1700_v52 }
 0x547   : > { %v1921_v38 = vrot.slane %v1913_v30, %v1700_v52  ;;  %v2898_v39 = vrot.slane %v1914_v31, %v1700_v52  ;;  %v1844_v43 = vrot.slane %v1830_v27, %v1700_v52  ;;  %v1749_v59 = vrot.slane %v1741_v19, %v2873_v1  ;;  %v2128_v19 = vld [vmem:[%s3020_s7] sm:$0xff] }
 0x548   : > { %v1853_v44 = vrot.slane %v1845_v34, %v1700_v52  ;;  %v1860_v45 = vrot.slane %v1846_v35, %v1700_v52  ;;  %1967 = vrot.lane.b32.xlu1 %v1757_v41, %s2706_s19  ;;  %v1817_v52 = vrot.slane %v1809_v14, %v2873_v1  ;;  %v1756_v61 = vrot.slane %v1742_v20, %v2873_v1 }
 0x549   : > { %v1929_v46 = vcombine.low %v1905_v33, %v1921_v38  ;;  %v1930_v47 = vcombine.high %v1905_v33, %v1921_v38  ;;  %v1945_v48 = vcombine.low %v2896_v37, %v2898_v39  ;;  %v1946_v49 = vcombine.high %v2896_v37, %v2898_v39  ;;  %2039 = vrot.lane.b32.xlu0 %v1808_v36, %s2707_s20 }
 0x54a   : > { %v1861_v50 = vcombine.low %v1837_v42, %v1853_v44  ;;  %v1862_v51 = vcombine.high %v1837_v42, %v1853_v44  ;;  %v1877_v53 = vcombine.low %v1844_v43, %v1860_v45  ;;  %v1878_v54 = vcombine.high %v1844_v43, %v1860_v45  ;;  %2609 = vmatprep.mubr.msk.f32.mxu0 %vm1069_vm3, %v2128_v19 }
 0x54b   : > { %v1937_v55 = vrot.slane %v1929_v46, %v2873_v1  ;;  %v1944_v56 = vrot.slane %v1930_v47, %v2873_v1  ;;  %v1953_v58 = vrot.slane %v1945_v48, %v2873_v1  ;;  %v1825_v63 = vcombine.high %v1801_v25, %v2705_v40  ;;  %2614 = vmatprep.mubr.msk.f32.mxu1 %vm1069_vm3, %v2128_v19 }
 0x54c   : > { %v1876_v60 = vrot.slane %v1862_v51, %v2873_v1  ;;  %v1885_v62 = vrot.slane %v1877_v53, %v2873_v1  ;;  %v1892_v0 = vrot.slane %v1878_v54, %v2873_v1  ;;  %v1826_v2 = vcombine.high %v1808_v36, %v2705_v40 }
 0x54d   : > { %2025 = vrot.lane.b32.xlu1 %v1937_v55, %s2704_s18  ;;  %2055 = vrot.lane.b32.xlu0 %v1817_v52, %s2708_s21  ;;  %v1961_v4 = vcombine.high %v1937_v55, %v2705_v40  ;;  %v1827_v6 = vcombine.high %v1817_v52, %v2705_v40  ;;  %v1962_v7 = vcombine.high %v1944_v56, %v2705_v40 }
 0x54e   : > { %v1758_v8 = vcombine.high %v1740_v57, %v2705_v40  ;;  %v1963_v9 = vcombine.high %v1953_v58, %v2705_v40  ;;  %v2925_v10 = vrot.slane %v1861_v50, %v2873_v1  ;;  %v1759_v11 = vcombine.high %v1749_v59, %v2705_v40 }
 0x54f   : > { %v1760_v13 = vcombine.high %v1756_v61, %v2705_v40  ;;  %v1894_v14 = vcombine.high %v1876_v60, %v2705_v40  ;;  %v1824_v16 = vrot.slane %v1810_v15, %v2873_v1  ;;  %v1895_v17 = vcombine.high %v1885_v62, %v2705_v40 }
 0x550   : > { %v1893_v12 = vcombine.high %v2925_v10, %v2705_v40  ;;  %v1896_v20 = vcombine.high %v1892_v0, %v2705_v40  ;;  %v1960_v3 = vrot.slane %v1946_v49, %v2873_v1 }
 0x551   : > { %2041 = vrot.lane.b32.xlu1 %v1944_v56, %s2707_s20  ;;  %1975 = vrot.lane.b32.xlu0 %v1740_v57, %s2709_s22  ;;  %v1828_v18 = vcombine.high %v1824_v16, %v2705_v40  ;;  %s410_s20 = scalar_lea.vmem %s3015_s2, %s2785_s9 }
 0x552   : > { %v1964_v5 = vcombine.high %v1960_v3, %v2705_v40 }
 0x555   : > { %2057 = vrot.lane.b32.xlu1 %v1953_v58, %s2708_s21  ;;  %1991 = vrot.lane.b32.xlu0 %v1749_v59, %s2710_s23 }
 0x559   : > { %1977 = vrot.lane.b32.xlu1 %v1876_v60, %s2709_s22  ;;  %2007 = vrot.lane.b32.xlu0 %v1756_v61, %s2711_s24 }
 0x55d   : > { %1993 = vrot.lane.b32.xlu1 %v1885_v62, %s2710_s23  ;;  %2031 = vrot.lane.b32.xlu0 %v1825_v63, %s2712_s25  ;;  %s417_s23 = scalar_lea.vmem %s3023_s10, %s2785_s9 }
 0x561   : > { %2009 = vrot.lane.b32.xlu1 %v1892_v0, %s2711_s24  ;;  %2047 = vrot.lane.b32.xlu0 %v1826_v2, %s2713_s26 }
 0x565   : > { %2033 = vrot.lane.b32.xlu1 %v1961_v4, %s2712_s25  ;;  %2063 = vrot.lane.b32.xlu0 %v1827_v6, %s2714_s27  ;;  %v2129_v4 = vld [vmem:[%s3020_s7 + $0x8] sm:$0xff] }
 0x569   : > { %2049 = vrot.lane.b32.xlu1 %v1962_v7, %s2713_s26  ;;  %1983 = vrot.lane.b32.xlu0 %v1758_v8, %s2715_s28 }
 0x56d   : > { %2065 = vrot.lane.b32.xlu1 %v1963_v9, %s2714_s27  ;;  %1999 = vrot.lane.b32.xlu0 %v1759_v11, %s2716_s29 }
 0x571   : > { %1969 = vrot.lane.b32.xlu1 %v1893_v12, %s2706_s19  ;;  %2015 = vrot.lane.b32.xlu0 %v1760_v13, %s2717_s30 }
 0x575   : > { %1985 = vrot.lane.b32.xlu1 %v1894_v14, %s2715_s28  ;;  %2071 = vrot.lane.b32.xlu0 %v1824_v16, %s2718_s11 }
 0x579   : > { %2001 = vrot.lane.b32.xlu1 %v1895_v17, %s2716_s29  ;;  %2079 = vrot.lane.b32.xlu0 %v1828_v18, %s2701_s12 }
 0x57d   : > { %2017 = vrot.lane.b32.xlu1 %v1896_v20, %s2717_s30  ;;  %v2293_v20 = vstv %s2292_s17 }
 0x581   : > { %2073 = vrot.lane.b32.xlu1 %v1960_v3, %s2718_s11 }
 0x585   : > { %2081 = vrot.lane.b32.xlu1 %v1964_v5, %s2701_s12  ;;  %v2299_v5 = vld [vmem:[%s410_s20 + $0x8] sm:$0xff] }
 0x5b7   : > { %v2024_v15 = vpop.permute.xlu0 %2023 }
 0x5ba   : > { %v1968_v21 = vpop.permute.xlu1 %1967 }
 0x5bb   : > { %v2040_v22 = vpop.permute.xlu0 %2039  ;;  %v2085_v37 = vsel %vm459_vm0, %v2893_v29, %v1968_v21 }
 0x5bf   : > { %v2952_v23 = vpop.permute.xlu1 %2025  ;;  %v2056_v24 = vpop.permute.xlu0 %2055 }
 0x5c3   : > { %v2954_v25 = vpop.permute.xlu1 %2041  ;;  %v1976_v26 = vpop.permute.xlu0 %1975 }
 0x5c4   : > { %v2087_v39 = vsel %vm840_vm2, %v2085_v37, %v1976_v26 }
 0x5c7   : > { %v2956_v27 = vpop.permute.xlu1 %2057  ;;  %v1992_v28 = vpop.permute.xlu0 %1991 }
 0x5cb   : > { %v1978_v30 = vpop.permute.xlu1 %1977  ;;  %v2008_v31 = vpop.permute.xlu0 %2007 }
 0x5cf   : > { %v1994_v1 = vpop.permute.xlu1 %1993  ;;  %v2032_v32 = vpop.permute.xlu0 %2031 }
 0x5d3   : > { %v2010_v33 = vpop.permute.xlu1 %2009  ;;  %v2048_v34 = vpop.permute.xlu0 %2047 }
 0x5d7   : > { %v2034_v35 = vpop.permute.xlu1 %2033  ;;  %v2064_v36 = vpop.permute.xlu0 %2063 }
 0x5db   : > { %v2050_v38 = vpop.permute.xlu1 %2049  ;;  %v1984_v40 = vpop.permute.xlu0 %1983 }
 0x5dc   : > { %v2090_v41 = vsel %vm2089_vm5, %v2087_v39, %v1984_v40 }
 0x5dd   : > { %v2093_v44 = vsel %vm2092_vm6, %v2090_v41, %v1992_v28 }
 0x5df   : > { %v2066_v42 = vpop.permute.xlu1 %2065  ;;  %v2000_v43 = vpop.permute.xlu0 %1999 }
 0x5e0   : > { %v2096_v45 = vsel %vm2095_vm7, %v2093_v44, %v2000_v43 }
 0x5e1   : > { %v2099_v47 = vsel %vm2098_vm8, %v2096_v45, %v2008_v31  ;;  %v2300_v31 = vld [vmem:[%s410_s20 + $0x10] sm:$0xff] }
 0x5e3   : > { %v1970_v46 = vpop.permute.xlu1 %1969  ;;  %v2016_v29 = vpop.permute.xlu0 %2015 }
 0x5e4   : > { %v2086_v48 = vsel %vm459_vm0, %v2925_v10, %v1970_v46  ;;  %v2102_v49 = vsel %vm2101_vm9, %v2099_v47, %v2016_v29  ;;  %vm2125_vm0 = vcmask 982016  }
 0x5e5   : > { %v2105_v50 = vsel %vm2104_vm10, %v2102_v49, %v2024_v15  ;;  %v2088_v53 = vsel %vm840_vm2, %v2086_v48, %v1978_v30 }
 0x5e6   : > { %v2108_v51 = vsel %vm2107_vm11, %v2105_v50, %v2032_v32 }
 0x5e7   : > { %v1986_v54 = vpop.permute.xlu1 %1985  ;;  %v2111_v55 = vsel %vm2110_vm12, %v2108_v51, %v2040_v22  ;;  %v2072_v52 = vpop.permute.xlu0 %2071  ;;  %v2298_v22 = vld [vmem:[%s410_s20] sm:$0xff] }
 0x5e8   : > { %v2091_v56 = vsel %vm2089_vm5, %v2088_v53, %v1986_v54  ;;  %v2114_v57 = vsel %vm2113_vm13, %v2111_v55, %v2048_v34 }
 0x5e9   : > { %v2117_v58 = vsel %vm2116_vm14, %v2114_v57, %v2056_v24  ;;  %v2094_v60 = vsel %vm2092_vm6, %v2091_v56, %v1994_v1 }
 0x5ea   : > { %v2120_v59 = vsel %vm2119_vm15, %v2117_v58, %v2064_v36 }
 0x5eb   : > { %v2002_v61 = vpop.permute.xlu1 %2001  ;;  %v2123_v62 = vsel %vm2122_vm1, %v2120_v59, %v2072_v52  ;;  %v2080_v63 = vpop.permute.xlu0 %2079 }
 0x5ec   : > { %v2097_v0 = vsel %vm2095_vm7, %v2094_v60, %v2002_v61  ;;  %v2126_v2 = vsel %vm2125_vm0, %v2123_v62, %v2080_v63 }
 0x5ed   : > { %2607 = vmatprep.subr.msk.mxu0 %vm1076_vm4, %v2126_v2  ;;  %v2100_v6 = vsel %vm2098_vm8, %v2097_v0, %v2010_v33 }
 0x5ee   : > { %2608 = vmatpush3.msk.msra.mxu0 %vm1076_vm4, %v2126_v2 }
 0x5ef   : > { %v2018_v7 = vpop.permute.xlu1 %2017  ;;  %2610 = vmatmul.mubr.msk.f32.vlgmr.msra.gmra.mrb[16].mxu0 %vm1069_vm3, %v2129_v4 }
 0x5f0   : > { %v2103_v8 = vsel %vm2101_vm9, %v2100_v6, %v2018_v7 }
 0x5f1   : > { %v2106_v9 = vsel %vm2104_vm10, %v2103_v8, %v2952_v23 }
 0x5f2   : > { %v2109_v10 = vsel %vm2107_vm11, %v2106_v9, %v2034_v35 }
 0x5f3   : > { %v2112_v11 = vsel %vm2110_vm12, %v2109_v10, %v2954_v25  ;;  %v2074_v12 = vpop.permute.xlu1 %2073 }
 0x5f4   : > { %v2115_v13 = vsel %vm2113_vm13, %v2112_v11, %v2050_v38 }
 0x5f5   : > { %v2118_v14 = vsel %vm2116_vm14, %v2115_v13, %v2956_v27  ;;  %v2301_v27 = vld [vmem:[%s410_s20 + $0x18] sm:$0xff] }
 0x5f6   : > { %v2121_v16 = vsel %vm2119_vm15, %v2118_v14, %v2066_v42 }
 0x5f7   : > { %v2124_v17 = vsel %vm2122_vm1, %v2121_v16, %v2074_v12  ;;  %v2082_v18 = vpop.permute.xlu1 %2081 }
 0x5f8   : > { %v2127_v19 = vsel %vm2125_vm0, %v2124_v17, %v2082_v18 }
 0x5f9   : > { %2612 = vmatprep.subr.msk.mxu1 %vm1076_vm4, %v2127_v19 }
 0x5fa   : > { %2613 = vmatpush3.msk.msra.mxu1 %vm1076_vm4, %v2127_v19 }
 0x5fb   : > { %2615 = vmatmul.mubr.msk.f32.vlgmr.msra.gmra.mrb[16].mxu1 %vm1069_vm3, %v2129_v4 }
 0x6c2   : > { %v2611_v3 = vpop.f32.mrb[16].mxu0 }
 0x6c3   : > { %v2295_v15 = vmul.f32 %v2611_v3, %v2293_v20  ;;  %v2205_v21 = vpop.f32.mrb[17].mxu0 }
 0x6c4   : > { %v2294_v23 = vmul.f32 %v2293_v20, %v2205_v21 }
 0x6c5   : > { %v2303_v24 = vadd.f32 %v2299_v5, %v2295_v15 }
 0x6c6   : > { %v2302_v25 = vadd.f32 %v2298_v22, %v2294_v23 }
 0x6c7   : > { %2307 = vst [vmem:[%s417_s23 + $0x8] sm:$0xff] %v2303_v24 }
 0x6c8   : > { %2306 = vst [vmem:[%s417_s23] sm:$0xff] %v2302_v25 }
 0x6ce   : > { %v2616_v26 = vpop.f32.mrb[16].mxu1 }
 0x6cf   : > { %v2297_v28 = vmul.f32 %v2616_v26, %v2293_v20  ;;  %v2283_v30 = vpop.f32.mrb[17].mxu1 }
 0x6d0   : > { %v2296_v1 = vmul.f32 %v2293_v20, %v2283_v30 }
 0x6d1   : > { %v2305_v32 = vadd.f32 %v2301_v27, %v2297_v28 }
 0x6d2   : > { %v2304_v33 = vadd.f32 %v2300_v31, %v2296_v1 }
 0x6d3   : > { %2309 = vst [vmem:[%s417_s23 + $0x18] sm:$0xff] %v2305_v32 }
 0x6d4   : > { %2308 = vst [vmem:[%s417_s23 + $0x10] sm:$0xff] %v2304_v33 }
 0x6d5 PF: > { %s21_s15 = sadd.s32 1, %s2698_s15  }
 0x6d6   : > { %p18_p4 = scmp.ge.s32.totalorder %s21_s15, 4  }
 0x6d8   :  { %20 = sbr.rel (!%p18_p4) target bundleno = 2 (0x2), region = 96 }

</bundles_post_ra>
